<compile_context>
chip_gen: v6e
topology: v6e:2x2x1
jax: 0.10.0
libtpu: 0.0.40
codegen_flags: <defaults>
</compile_context>

<pallas_src>
import functools
import math

import jax
import jax.numpy as jnp
from jax.experimental import pallas as pl
from jax.experimental.pallas import tpu as pltpu


def _round_up(x, m):
    return ((x + m - 1) // m) * m


def _softplus(x):
    # PyTorch F.softplus defaults (beta=1, threshold=20), overflow-safe.
    return jnp.where(x > 20.0, x, jnp.log1p(jnp.exp(jnp.minimum(x, 20.0))))


# -----------------------------------------------------------------------------
# Kernel
# -----------------------------------------------------------------------------
def _encoder_kernel(
    x_ref, eps0_ref, eps_ref,
    wx_ref, bx_ref,            # fused first layer: [wa1 | we1x], [ba1 | be1]
    wa2_ref, ba2_ref,          # aux hidden layer 2
    wh0_ref, bh0_ref,          # fused aux heads:   [wmu0 | wlv0]
    we1z_ref,                  # z0 part of SimpleEncoder layer 1
    we2_ref, be2_ref,          # simple hidden layer 2
    wh_ref, bh_ref,            # fused heads:       [wmu | wlv]
    z_ref,
    *, std, h_pad, n_pad, z_pad,
):
    f32 = jnp.float32
    bf16 = jnp.bfloat16

    x = x_ref[...]                                                     # (TB, D_pad) bf16

    # --- fused first-layer matmul: one pass over x feeds both branches ---
    pre = jnp.dot(x, wx_ref[...], preferred_element_type=f32) + bx_ref[...]
    pre_a1 = pre[:, :h_pad]        # AuxEncoder layer-1 pre-activation (ba1 included)
    pre_e1 = pre[:, h_pad:]        # SimpleEncoder layer-1 x-part      (be1 included)

    # --- AuxEncoder: q(z0 | x) ---
    h0 = _softplus(pre_a1)
    h0 = _softplus(jnp.dot(h0.astype(bf16), wa2_ref[...],
                           preferred_element_type=f32) + ba2_ref[...])
    head0 = jnp.dot(h0.astype(bf16), wh0_ref[...],
                    preferred_element_type=f32) + bh0_ref[...]
    mu0, lv0 = head0[:, :n_pad], head0[:, n_pad:]
    # z0 = mu0 + std * exp(0.5*logvar0) * eps0   (f32 reparameterization)
    z0 = mu0 + std * jnp.exp(0.5 * lv0) * eps0_ref[...]

    # --- SimpleEncoder: q(z | x, z0)  (concat expressed as split matmul) ---
    h = _softplus(pre_e1 + jnp.dot(z0.astype(bf16), we1z_ref[...],
                                   preferred_element_type=f32))
    h = _softplus(jnp.dot(h.astype(bf16), we2_ref[...],
                          preferred_element_type=f32) + be2_ref[...])
    head = jnp.dot(h.astype(bf16), wh_ref[...],
                   preferred_element_type=f32) + bh_ref[...]
    mu, lv = head[:, :z_pad], head[:, z_pad:]
    # z = mu + std * exp(0.5*logvar) * eps   (lane-dense padded store)
    z_ref[...] = mu + std * jnp.exp(0.5 * lv) * eps_ref[...]


# -----------------------------------------------------------------------------
# Parameter init / packing
# -----------------------------------------------------------------------------
def _linear_init(key, fan_in, fan_out):
    bound = 1.0 / math.sqrt(fan_in)
    kw, kb = jax.random.split(key)
    w = jax.random.uniform(kw, (fan_in, fan_out), jnp.float32, -bound, bound)
    b = jax.random.uniform(kb, (1, fan_out), jnp.float32, -bound, bound)
    return w, b


def init_encoder_params(key, input_dim, noise_dim, h_dim, z_dim):
    ks = jax.random.split(key, 8)
    wa1, ba1 = _linear_init(ks[0], input_dim, h_dim)          # AuxEncoder
    wa2, ba2 = _linear_init(ks[1], h_dim, h_dim)
    wmu0, bmu0 = _linear_init(ks[2], h_dim, noise_dim)
    wlv0, blv0 = _linear_init(ks[3], h_dim, noise_dim)
    we1, be1 = _linear_init(ks[4], input_dim + noise_dim, h_dim)  # SimpleEncoder
    we2, be2 = _linear_init(ks[5], h_dim, h_dim)
    wmu, bmu = _linear_init(ks[6], h_dim, z_dim)
    wlv, blv = _linear_init(ks[7], h_dim, z_dim)
    return dict(wa1=wa1, ba1=ba1, wa2=wa2, ba2=ba2, wmu0=wmu0, bmu0=bmu0,
                wlv0=wlv0, blv0=blv0, we1=we1, be1=be1, we2=we2, be2=be2,
                wmu=wmu, bmu=bmu, wlv=wlv, blv=blv)


def _pad2(w, rows, cols):
    return jnp.pad(w, ((0, rows - w.shape[0]), (0, cols - w.shape[1])))


def pack_encoder_params(params, *, input_dim, noise_dim, h_dim, z_dim):
    """Pad every feature dim to a lane multiple (128), fuse the x-consuming and
    mu/logvar-head matmuls, and cast weights to bf16 (biases stay f32)."""
    D = _round_up(input_dim, 128)
    H = _round_up(h_dim, 128)
    N = _round_up(noise_dim, 128)
    Z = _round_up(z_dim, 128)

    we1x = params["we1"][:input_dim]     # x rows of the concat weight
    we1z = params["we1"][input_dim:]     # z0 rows of the concat weight

    wx = jnp.concatenate([_pad2(params["wa1"], D, H), _pad2(we1x, D, H)], axis=1)
    bx = jnp.concatenate([_pad2(params["ba1"], 1, H), _pad2(params["be1"], 1, H)], axis=1)
    wh0 = jnp.concatenate([_pad2(params["wmu0"], H, N), _pad2(params["wlv0"], H, N)], axis=1)
    bh0 = jnp.concatenate([_pad2(params["bmu0"], 1, N), _pad2(params["blv0"], 1, N)], axis=1)
    wh = jnp.concatenate([_pad2(params["wmu"], H, Z), _pad2(params["wlv"], H, Z)], axis=1)
    bh = jnp.concatenate([_pad2(params["bmu"], 1, Z), _pad2(params["blv"], 1, Z)], axis=1)

    packed = dict(
        wx=wx.astype(jnp.bfloat16), bx=bx,
        wa2=_pad2(params["wa2"], H, H).astype(jnp.bfloat16),
        ba2=_pad2(params["ba2"], 1, H),
        wh0=wh0.astype(jnp.bfloat16), bh0=bh0,
        we1z=_pad2(we1z, N, H).astype(jnp.bfloat16),
        we2=_pad2(params["we2"], H, H).astype(jnp.bfloat16),
        be2=_pad2(params["be2"], 1, H),
        wh=wh.astype(jnp.bfloat16), bh=bh,
    )
    dims = (D, H, N, Z)
    return packed, dims


# -----------------------------------------------------------------------------
# Forward wrapper
# -----------------------------------------------------------------------------
def encoder_forward(x, eps0, eps, packed, dims, *, input_dim, noise_dim, z_dim,
                    std=None, nz=1, row_tile=256):
    """Returns z of shape (B, nz, z_dim), matching Encoder.forward."""
    D, H, N, Z = dims
    B = x.shape[0]
    std_val = 1.0 if std is None else float(std)

    # Row tile over the batch axis (multiple of 8, capped by row_tile).
    TB = max(8, min(_round_up(row_tile, 8), _round_up(B, 8)))
    B_pad = _round_up(B, TB)
    nb = B_pad // TB

    # x: one copy only (no jnp.repeat across nz); padded to (B_pad, D) bf16.
    x_flat = x.reshape(B, input_dim).astype(jnp.float32)
    x_p = jnp.zeros((B_pad, D), jnp.bfloat16).at[:B, :input_dim].set(
        x_flat.astype(jnp.bfloat16))

    # eps rows in the PyTorch forward are (b, n) with n fastest (repeat-interleave).
    # Reorder to n-major so each row tile covers a single n value, padded to lanes.
    def reorder_pad(e, feat, feat_pad):
        e = e.reshape(B, nz, feat).astype(jnp.float32)
        e = jnp.transpose(e, (1, 0, 2))                     # (nz, B, feat)
        out = jnp.zeros((nz, B_pad, feat_pad), jnp.float32).at[:, :B, :feat].set(e)
        return out.reshape(nz * B_pad, feat_pad)

    eps0_p = reorder_pad(eps0, noise_dim, N)
    eps_p = reorder_pad(eps, z_dim, Z)

    row_map = lambda b, n: (n * nb + b, 0)      # row-tiled activations / output
    x_map = lambda b, n: (b, 0)                 # x tile reused across nz
    const = lambda b, n: (0, 0)                 # weights resident in VMEM

    weight_names = ["wx", "bx", "wa2", "ba2", "wh0", "bh0",
                    "we1z", "we2", "be2", "wh", "bh"]
    weight_ops = [packed[k] for k in weight_names]
    weight_specs = [pl.BlockSpec(w.shape, const) for w in weight_ops]

    kernel = functools.partial(_encoder_kernel, std=std_val,
                               h_pad=H, n_pad=N, z_pad=Z)

    z_padded = pl.pallas_call(
        kernel,
        out_shape=jax.ShapeDtypeStruct((nz * B_pad, Z), jnp.float32),
        grid_spec=pltpu.PrefetchScalarGridSpec(
            num_scalar_prefetch=0,
            grid=(nb, nz),
            in_specs=[
                pl.BlockSpec((TB, D), x_map),
                pl.BlockSpec((TB, N), row_map),
                pl.BlockSpec((TB, Z), row_map),
                *weight_specs,
            ],
            out_specs=pl.BlockSpec((TB, Z), row_map),
        ),
        compiler_params=pltpu.CompilerParams(
            dimension_semantics=("parallel", "arbitrary")),
    )(x_p, eps0_p, eps_p, *weight_ops)

    # Undo padding and n-major ordering: (nz, B_pad, Z) -> (B, nz, z_dim).
    z = z_padded.reshape(nz, B_pad, Z)[:, :B, :z_dim]
    return jnp.transpose(z, (1, 0, 2))


# -----------------------------------------------------------------------------
# Pure-JAX reference (f32, mirrors the PyTorch forward exactly)
# -----------------------------------------------------------------------------
def encoder_reference(x, eps0, eps, raw, *, input_dim, noise_dim, z_dim,
                      std=None, nz=1):
    B = x.shape[0]
    std_val = 1.0 if std is None else float(std)
    xf = x.reshape(B, input_dim).astype(jnp.float32)

    h0 = _softplus(xf @ raw["wa1"] + raw["ba1"])
    h0 = _softplus(h0 @ raw["wa2"] + raw["ba2"])
    mu0 = jnp.repeat(h0 @ raw["wmu0"] + raw["bmu0"], nz, axis=0)
    lv0 = jnp.repeat(h0 @ raw["wlv0"] + raw["blv0"], nz, axis=0)
    e0 = eps0.reshape(B * nz, noise_dim).astype(jnp.float32)
    z0 = mu0 + std_val * jnp.exp(0.5 * lv0) * e0

    x_rep = jnp.repeat(xf, nz, axis=0)
    xz = jnp.concatenate([x_rep, z0], axis=1)
    h = _softplus(xz @ raw["we1"] + raw["be1"])
    h = _softplus(h @ raw["we2"] + raw["be2"])
    mu = h @ raw["wmu"] + raw["bmu"]
    lv = h @ raw["wlv"] + raw["blv"]
    e = eps.reshape(B * nz, z_dim).astype(jnp.float32)
    z = mu + std_val * jnp.exp(0.5 * lv) * e
    return z.reshape(B, nz, z_dim)


# -----------------------------------------------------------------------------
# Demo
# -----------------------------------------------------------------------------
if __name__ == "__main__":
    B = 2
    INPUT_DIM = 64      # e.g. x of shape (B, 1, 8, 8) flattened
    NOISE_DIM = 16
    H_DIM = 32
    Z_DIM = 16
    NZ = 1

    key = jax.random.PRNGKey(0)
    k_x, k_e0, k_e, k_p = jax.random.split(key, 4)

    x = jax.random.normal(k_x, (B, 1, 8, 8), jnp.float32)               # NCHW input
    # sample_noise() in the original module (torch.randn) is done host-side here.
    eps0 = jax.random.normal(k_e0, (B * NZ, NOISE_DIM), jnp.float32)
    eps = jax.random.normal(k_e, (B * NZ, 1, Z_DIM), jnp.float32)

    raw = init_encoder_params(k_p, INPUT_DIM, NOISE_DIM, H_DIM, Z_DIM)
    packed, dims = pack_encoder_params(raw, input_dim=INPUT_DIM,
                                       noise_dim=NOISE_DIM, h_dim=H_DIM,
                                       z_dim=Z_DIM)

    z = encoder_forward(x, eps0, eps, packed, dims,
                        input_dim=INPUT_DIM, noise_dim=NOISE_DIM, z_dim=Z_DIM,
                        std=None, nz=NZ)
    jax.block_until_ready(z)
    assert z.shape == (B, NZ, Z_DIM)

    # Correctness sanity vs pure-JAX f32 reference (bf16 MXU operands -> loose tol).
    z_ref = encoder_reference(x, eps0, eps, raw, input_dim=INPUT_DIM,
                              noise_dim=NOISE_DIM, z_dim=Z_DIM, std=None, nz=NZ)
    err = jnp.max(jnp.abs(z - z_ref))
    assert bool(jnp.all(jnp.isfinite(z)))
    assert float(err) < 1e-1, f"max abs error {float(err)}"

    print("KERNEL_OK")
</pallas_src>

<mosaic_0001>
module attributes {stable_mosaic.version = 11 : i64} {
  func.func @_encoder_kernel(%arg0: i32, %arg1: i32, %arg2: memref<8x128xbf16, #tpu.memory_space<vmem>>, %arg3: memref<8x128xf32, #tpu.memory_space<vmem>>, %arg4: memref<8x128xf32, #tpu.memory_space<vmem>>, %arg5: memref<128x256xbf16, #tpu.memory_space<vmem>>, %arg6: memref<1x256xf32, #tpu.memory_space<vmem>>, %arg7: memref<128x128xbf16, #tpu.memory_space<vmem>>, %arg8: memref<1x128xf32, #tpu.memory_space<vmem>>, %arg9: memref<128x256xbf16, #tpu.memory_space<vmem>>, %arg10: memref<1x256xf32, #tpu.memory_space<vmem>>, %arg11: memref<128x128xbf16, #tpu.memory_space<vmem>>, %arg12: memref<128x128xbf16, #tpu.memory_space<vmem>>, %arg13: memref<1x128xf32, #tpu.memory_space<vmem>>, %arg14: memref<128x256xbf16, #tpu.memory_space<vmem>>, %arg15: memref<1x256xf32, #tpu.memory_space<vmem>>, %arg16: memref<8x128xf32, #tpu.memory_space<vmem>>) attributes {dimension_semantics = [#tpu.dimension_semantics<parallel>, #tpu.dimension_semantics<arbitrary>], iteration_bounds = array<i64: 1, 1>, scalar_prefetch = 0 : i64, scratch_operands = 0 : i64, tpu.core_type = #tpu.core_type<tc>, window_params = [{transform_indices = @transform_0, window_bounds = array<i64: 8, 128>}, {transform_indices = @transform_1, window_bounds = array<i64: 8, 128>}, {transform_indices = @transform_2, window_bounds = array<i64: 8, 128>}, {pipeline_mode = #tpu.pipeline_mode<synchronous>, transform_indices = @transform_3, window_bounds = array<i64: 128, 256>}, {pipeline_mode = #tpu.pipeline_mode<synchronous>, transform_indices = @transform_4, window_bounds = array<i64: 1, 256>}, {pipeline_mode = #tpu.pipeline_mode<synchronous>, transform_indices = @transform_5, window_bounds = array<i64: 128, 128>}, {pipeline_mode = #tpu.pipeline_mode<synchronous>, transform_indices = @transform_6, window_bounds = array<i64: 1, 128>}, {pipeline_mode = #tpu.pipeline_mode<synchronous>, transform_indices = @transform_7, window_bounds = array<i64: 128, 256>}, {pipeline_mode = #tpu.pipeline_mode<synchronous>, transform_indices = @transform_8, window_bounds = array<i64: 1, 256>}, {pipeline_mode = #tpu.pipeline_mode<synchronous>, transform_indices = @transform_9, window_bounds = array<i64: 128, 128>}, {pipeline_mode = #tpu.pipeline_mode<synchronous>, transform_indices = @transform_10, window_bounds = array<i64: 128, 128>}, {pipeline_mode = #tpu.pipeline_mode<synchronous>, transform_indices = @transform_11, window_bounds = array<i64: 1, 128>}, {pipeline_mode = #tpu.pipeline_mode<synchronous>, transform_indices = @transform_12, window_bounds = array<i64: 128, 256>}, {pipeline_mode = #tpu.pipeline_mode<synchronous>, transform_indices = @transform_13, window_bounds = array<i64: 1, 256>}, {transform_indices = @transform_14, window_bounds = array<i64: 8, 128>}]} {
    %c0 = arith.constant 0 : index
    %c0_0 = arith.constant 0 : index
    %0 = vector.load %arg2[%c0, %c0_0] : memref<8x128xbf16, #tpu.memory_space<vmem>>, vector<8x128xbf16>
    %c0_1 = arith.constant 0 : index
    %c0_2 = arith.constant 0 : index
    %1 = vector.load %arg5[%c0_1, %c0_2] : memref<128x256xbf16, #tpu.memory_space<vmem>>, vector<128x256xbf16>
    %cst = arith.constant dense<0.000000e+00> : vector<8x256xf32>
    %2 = tpu.matmul %0, %1, %cst {dimension_numbers = #tpu.dot_dimension_numbers<[1], [0], [0], [1], [0, 0, 1, 1], [], []>} : vector<8x128xbf16>, vector<128x256xbf16>, vector<8x256xf32> -> vector<8x256xf32>
    %c0_3 = arith.constant 0 : index
    %c0_4 = arith.constant 0 : index
    %3 = vector.load %arg6[%c0_3, %c0_4] : memref<1x256xf32, #tpu.memory_space<vmem>>, vector<1x256xf32>
    %4 = vector.broadcast %3 : vector<1x256xf32> to vector<8x256xf32>
    %5 = arith.addf %2, %4 : vector<8x256xf32>
    %6 = vector.extract_strided_slice %5 {offsets = [0, 0], sizes = [8, 128], strides = [1, 1]} : vector<8x256xf32> to vector<8x128xf32>
    %7 = vector.extract_strided_slice %5 {offsets = [0, 128], sizes = [8, 128], strides = [1, 1]} : vector<8x256xf32> to vector<8x128xf32>
    %cst_5 = arith.constant 2.000000e+01 : f32
    %8 = vector.broadcast %cst_5 : f32 to vector<8x128xf32>
    %9 = arith.cmpf ogt, %6, %8 : vector<8x128xf32>
    %cst_6 = arith.constant 2.000000e+01 : f32
    %10 = vector.broadcast %cst_6 : f32 to vector<8x128xf32>
    %11 = arith.minimumf %6, %10 : vector<8x128xf32>
    %12 = math.exp %11 : vector<8x128xf32>
    %13 = math.log1p %12 : vector<8x128xf32>
    %14 = arith.select %9, %6, %13 : vector<8x128xi1>, vector<8x128xf32>
    %15 = arith.truncf %14 : vector<8x128xf32> to vector<8x128xbf16>
    %c0_7 = arith.constant 0 : index
    %c0_8 = arith.constant 0 : index
    %16 = vector.load %arg7[%c0_7, %c0_8] : memref<128x128xbf16, #tpu.memory_space<vmem>>, vector<128x128xbf16>
    %cst_9 = arith.constant dense<0.000000e+00> : vector<8x128xf32>
    %17 = tpu.matmul %15, %16, %cst_9 {dimension_numbers = #tpu.dot_dimension_numbers<[1], [0], [0], [1], [0, 0, 1, 1], [], []>} : vector<8x128xbf16>, vector<128x128xbf16>, vector<8x128xf32> -> vector<8x128xf32>
    %c0_10 = arith.constant 0 : index
    %c0_11 = arith.constant 0 : index
    %18 = vector.load %arg8[%c0_10, %c0_11] : memref<1x128xf32, #tpu.memory_space<vmem>>, vector<1x128xf32>
    %19 = vector.broadcast %18 : vector<1x128xf32> to vector<8x128xf32>
    %20 = arith.addf %17, %19 : vector<8x128xf32>
    %cst_12 = arith.constant 2.000000e+01 : f32
    %21 = vector.broadcast %cst_12 : f32 to vector<8x128xf32>
    %22 = arith.cmpf ogt, %20, %21 : vector<8x128xf32>
    %cst_13 = arith.constant 2.000000e+01 : f32
    %23 = vector.broadcast %cst_13 : f32 to vector<8x128xf32>
    %24 = arith.minimumf %20, %23 : vector<8x128xf32>
    %25 = math.exp %24 : vector<8x128xf32>
    %26 = math.log1p %25 : vector<8x128xf32>
    %27 = arith.select %22, %20, %26 : vector<8x128xi1>, vector<8x128xf32>
    %28 = arith.truncf %27 : vector<8x128xf32> to vector<8x128xbf16>
    %c0_14 = arith.constant 0 : index
    %c0_15 = arith.constant 0 : index
    %29 = vector.load %arg9[%c0_14, %c0_15] : memref<128x256xbf16, #tpu.memory_space<vmem>>, vector<128x256xbf16>
    %cst_16 = arith.constant dense<0.000000e+00> : vector<8x256xf32>
    %30 = tpu.matmul %28, %29, %cst_16 {dimension_numbers = #tpu.dot_dimension_numbers<[1], [0], [0], [1], [0, 0, 1, 1], [], []>} : vector<8x128xbf16>, vector<128x256xbf16>, vector<8x256xf32> -> vector<8x256xf32>
    %c0_17 = arith.constant 0 : index
    %c0_18 = arith.constant 0 : index
    %31 = vector.load %arg10[%c0_17, %c0_18] : memref<1x256xf32, #tpu.memory_space<vmem>>, vector<1x256xf32>
    %32 = vector.broadcast %31 : vector<1x256xf32> to vector<8x256xf32>
    %33 = arith.addf %30, %32 : vector<8x256xf32>
    %34 = vector.extract_strided_slice %33 {offsets = [0, 0], sizes = [8, 128], strides = [1, 1]} : vector<8x256xf32> to vector<8x128xf32>
    %35 = vector.extract_strided_slice %33 {offsets = [0, 128], sizes = [8, 128], strides = [1, 1]} : vector<8x256xf32> to vector<8x128xf32>
    %cst_19 = arith.constant 5.000000e-01 : f32
    %36 = vector.broadcast %cst_19 : f32 to vector<8x128xf32>
    %37 = arith.mulf %36, %35 : vector<8x128xf32>
    %38 = math.exp %37 : vector<8x128xf32>
    %cst_20 = arith.constant 1.000000e+00 : f32
    %39 = vector.broadcast %cst_20 : f32 to vector<8x128xf32>
    %40 = arith.mulf %39, %38 : vector<8x128xf32>
    %c0_21 = arith.constant 0 : index
    %c0_22 = arith.constant 0 : index
    %41 = vector.load %arg3[%c0_21, %c0_22] : memref<8x128xf32, #tpu.memory_space<vmem>>, vector<8x128xf32>
    %42 = arith.mulf %40, %41 : vector<8x128xf32>
    %43 = arith.addf %34, %42 : vector<8x128xf32>
    %44 = arith.truncf %43 : vector<8x128xf32> to vector<8x128xbf16>
    %c0_23 = arith.constant 0 : index
    %c0_24 = arith.constant 0 : index
    %45 = vector.load %arg11[%c0_23, %c0_24] : memref<128x128xbf16, #tpu.memory_space<vmem>>, vector<128x128xbf16>
    %cst_25 = arith.constant dense<0.000000e+00> : vector<8x128xf32>
    %46 = tpu.matmul %44, %45, %cst_25 {dimension_numbers = #tpu.dot_dimension_numbers<[1], [0], [0], [1], [0, 0, 1, 1], [], []>} : vector<8x128xbf16>, vector<128x128xbf16>, vector<8x128xf32> -> vector<8x128xf32>
    %47 = arith.addf %7, %46 : vector<8x128xf32>
    %cst_26 = arith.constant 2.000000e+01 : f32
    %48 = vector.broadcast %cst_26 : f32 to vector<8x128xf32>
    %49 = arith.cmpf ogt, %47, %48 : vector<8x128xf32>
    %cst_27 = arith.constant 2.000000e+01 : f32
    %50 = vector.broadcast %cst_27 : f32 to vector<8x128xf32>
    %51 = arith.minimumf %47, %50 : vector<8x128xf32>
    %52 = math.exp %51 : vector<8x128xf32>
    %53 = math.log1p %52 : vector<8x128xf32>
    %54 = arith.select %49, %47, %53 : vector<8x128xi1>, vector<8x128xf32>
    %55 = arith.truncf %54 : vector<8x128xf32> to vector<8x128xbf16>
    %c0_28 = arith.constant 0 : index
    %c0_29 = arith.constant 0 : index
    %56 = vector.load %arg12[%c0_28, %c0_29] : memref<128x128xbf16, #tpu.memory_space<vmem>>, vector<128x128xbf16>
    %cst_30 = arith.constant dense<0.000000e+00> : vector<8x128xf32>
    %57 = tpu.matmul %55, %56, %cst_30 {dimension_numbers = #tpu.dot_dimension_numbers<[1], [0], [0], [1], [0, 0, 1, 1], [], []>} : vector<8x128xbf16>, vector<128x128xbf16>, vector<8x128xf32> -> vector<8x128xf32>
    %c0_31 = arith.constant 0 : index
    %c0_32 = arith.constant 0 : index
    %58 = vector.load %arg13[%c0_31, %c0_32] : memref<1x128xf32, #tpu.memory_space<vmem>>, vector<1x128xf32>
    %59 = vector.broadcast %58 : vector<1x128xf32> to vector<8x128xf32>
    %60 = arith.addf %57, %59 : vector<8x128xf32>
    %cst_33 = arith.constant 2.000000e+01 : f32
    %61 = vector.broadcast %cst_33 : f32 to vector<8x128xf32>
    %62 = arith.cmpf ogt, %60, %61 : vector<8x128xf32>
    %cst_34 = arith.constant 2.000000e+01 : f32
    %63 = vector.broadcast %cst_34 : f32 to vector<8x128xf32>
    %64 = arith.minimumf %60, %63 : vector<8x128xf32>
    %65 = math.exp %64 : vector<8x128xf32>
    %66 = math.log1p %65 : vector<8x128xf32>
    %67 = arith.select %62, %60, %66 : vector<8x128xi1>, vector<8x128xf32>
    %68 = arith.truncf %67 : vector<8x128xf32> to vector<8x128xbf16>
    %c0_35 = arith.constant 0 : index
    %c0_36 = arith.constant 0 : index
    %69 = vector.load %arg14[%c0_35, %c0_36] : memref<128x256xbf16, #tpu.memory_space<vmem>>, vector<128x256xbf16>
    %cst_37 = arith.constant dense<0.000000e+00> : vector<8x256xf32>
    %70 = tpu.matmul %68, %69, %cst_37 {dimension_numbers = #tpu.dot_dimension_numbers<[1], [0], [0], [1], [0, 0, 1, 1], [], []>} : vector<8x128xbf16>, vector<128x256xbf16>, vector<8x256xf32> -> vector<8x256xf32>
    %c0_38 = arith.constant 0 : index
    %c0_39 = arith.constant 0 : index
    %71 = vector.load %arg15[%c0_38, %c0_39] : memref<1x256xf32, #tpu.memory_space<vmem>>, vector<1x256xf32>
    %72 = vector.broadcast %71 : vector<1x256xf32> to vector<8x256xf32>
    %73 = arith.addf %70, %72 : vector<8x256xf32>
    %74 = vector.extract_strided_slice %73 {offsets = [0, 0], sizes = [8, 128], strides = [1, 1]} : vector<8x256xf32> to vector<8x128xf32>
    %75 = vector.extract_strided_slice %73 {offsets = [0, 128], sizes = [8, 128], strides = [1, 1]} : vector<8x256xf32> to vector<8x128xf32>
    %cst_40 = arith.constant 5.000000e-01 : f32
    %76 = vector.broadcast %cst_40 : f32 to vector<8x128xf32>
    %77 = arith.mulf %76, %75 : vector<8x128xf32>
    %78 = math.exp %77 : vector<8x128xf32>
    %cst_41 = arith.constant 1.000000e+00 : f32
    %79 = vector.broadcast %cst_41 : f32 to vector<8x128xf32>
    %80 = arith.mulf %79, %78 : vector<8x128xf32>
    %c0_42 = arith.constant 0 : index
    %c0_43 = arith.constant 0 : index
    %81 = vector.load %arg4[%c0_42, %c0_43] : memref<8x128xf32, #tpu.memory_space<vmem>>, vector<8x128xf32>
    %82 = arith.mulf %80, %81 : vector<8x128xf32>
    %83 = arith.addf %74, %82 : vector<8x128xf32>
    %c0_44 = arith.constant 0 : index
    %c0_45 = arith.constant 0 : index
    %84 = vector.load %arg16[%c0_44, %c0_45] : memref<8x128xf32, #tpu.memory_space<vmem>>, vector<8x128xf32>
    tpu.vector_store %arg16[%c0_44, %c0_45], %83 {strides = array<i32>} : memref<8x128xf32, #tpu.memory_space<vmem>>, vector<8x128xf32>,
    return
  }
  func.func @transform_0(%arg0: i32, %arg1: i32) -> (i32, i32) {
    %c0_i32 = arith.constant 0 : i32
    %c0_i32_0 = arith.constant 0 : i32
    return %arg0, %c0_i32 : i32, i32
  }
  func.func @transform_1(%arg0: i32, %arg1: i32) -> (i32, i32) {
    %c1_i32 = arith.constant 1 : i32
    %0 = arith.muli %arg1, %c1_i32 : i32
    %1 = arith.addi %0, %arg0 : i32
    %c0_i32 = arith.constant 0 : i32
    %c0_i32_0 = arith.constant 0 : i32
    return %1, %c0_i32 : i32, i32
  }
  func.func @transform_2(%arg0: i32, %arg1: i32) -> (i32, i32) {
    %c1_i32 = arith.constant 1 : i32
    %0 = arith.muli %arg1, %c1_i32 : i32
    %1 = arith.addi %0, %arg0 : i32
    %c0_i32 = arith.constant 0 : i32
    %c0_i32_0 = arith.constant 0 : i32
    return %1, %c0_i32 : i32, i32
  }
  func.func @transform_3(%arg0: i32, %arg1: i32) -> (i32, i32) {
    %c0_i32 = arith.constant 0 : i32
    %c0_i32_0 = arith.constant 0 : i32
    %c0_i32_1 = arith.constant 0 : i32
    return %c0_i32, %c0_i32_0 : i32, i32
  }
  func.func @transform_4(%arg0: i32, %arg1: i32) -> (i32, i32) {
    %c0_i32 = arith.constant 0 : i32
    %c0_i32_0 = arith.constant 0 : i32
    %c0_i32_1 = arith.constant 0 : i32
    return %c0_i32, %c0_i32_0 : i32, i32
  }
  func.func @transform_5(%arg0: i32, %arg1: i32) -> (i32, i32) {
    %c0_i32 = arith.constant 0 : i32
    %c0_i32_0 = arith.constant 0 : i32
    %c0_i32_1 = arith.constant 0 : i32
    return %c0_i32, %c0_i32_0 : i32, i32
  }
  func.func @transform_6(%arg0: i32, %arg1: i32) -> (i32, i32) {
    %c0_i32 = arith.constant 0 : i32
    %c0_i32_0 = arith.constant 0 : i32
    %c0_i32_1 = arith.constant 0 : i32
    return %c0_i32, %c0_i32_0 : i32, i32
  }
  func.func @transform_7(%arg0: i32, %arg1: i32) -> (i32, i32) {
    %c0_i32 = arith.constant 0 : i32
    %c0_i32_0 = arith.constant 0 : i32
    %c0_i32_1 = arith.constant 0 : i32
    return %c0_i32, %c0_i32_0 : i32, i32
  }
  func.func @transform_8(%arg0: i32, %arg1: i32) -> (i32, i32) {
    %c0_i32 = arith.constant 0 : i32
    %c0_i32_0 = arith.constant 0 : i32
    %c0_i32_1 = arith.constant 0 : i32
    return %c0_i32, %c0_i32_0 : i32, i32
  }
  func.func @transform_9(%arg0: i32, %arg1: i32) -> (i32, i32) {
    %c0_i32 = arith.constant 0 : i32
    %c0_i32_0 = arith.constant 0 : i32
    %c0_i32_1 = arith.constant 0 : i32
    return %c0_i32, %c0_i32_0 : i32, i32
  }
  func.func @transform_10(%arg0: i32, %arg1: i32) -> (i32, i32) {
    %c0_i32 = arith.constant 0 : i32
    %c0_i32_0 = arith.constant 0 : i32
    %c0_i32_1 = arith.constant 0 : i32
    return %c0_i32, %c0_i32_0 : i32, i32
  }
  func.func @transform_11(%arg0: i32, %arg1: i32) -> (i32, i32) {
    %c0_i32 = arith.constant 0 : i32
    %c0_i32_0 = arith.constant 0 : i32
    %c0_i32_1 = arith.constant 0 : i32
    return %c0_i32, %c0_i32_0 : i32, i32
  }
  func.func @transform_12(%arg0: i32, %arg1: i32) -> (i32, i32) {
    %c0_i32 = arith.constant 0 : i32
    %c0_i32_0 = arith.constant 0 : i32
    %c0_i32_1 = arith.constant 0 : i32
    return %c0_i32, %c0_i32_0 : i32, i32
  }
  func.func @transform_13(%arg0: i32, %arg1: i32) -> (i32, i32) {
    %c0_i32 = arith.constant 0 : i32
    %c0_i32_0 = arith.constant 0 : i32
    %c0_i32_1 = arith.constant 0 : i32
    return %c0_i32, %c0_i32_0 : i32, i32
  }
  func.func @transform_14(%arg0: i32, %arg1: i32) -> (i32, i32) {
    %c1_i32 = arith.constant 1 : i32
    %0 = arith.muli %arg1, %c1_i32 : i32
    %1 = arith.addi %0, %arg0 : i32
    %c0_i32 = arith.constant 0 : i32
    %c0_i32_0 = arith.constant 0 : i32
    return %1, %c0_i32 : i32, i32
  }
}

</mosaic_0001>

<bundles_post_ra>
// kernel: tpu_custom_call.1
= control target key start
LH: loop header
LB: loop body
LE: loop exit
PB: predicated region body
PF: predicated region fallthrough
CT: control target
= control target key end

     0   :  { %19 = vsyncpa [#allocation3], 0  ;;  %s1760_s0 = inlined_call_operand.hbm [shape: bf16[8,128], index: 0, kind: input, shape index: {}]   ;;  %s1761_s1 = inlined_call_operand.hbm [shape: f32[8,128], index: 1, kind: input, shape index: {}]   ;;  %s1762_s2 = inlined_call_operand.hbm [shape: f32[8,128], index: 2, kind: input, shape index: {}]   ;;  %s1763_s3 = inlined_call_operand.hbm [shape: bf16[128,256], index: 3, kind: input, shape index: {}]   ;;  %s1764_s4 = inlined_call_operand.vmem [shape: f32[1,256], index: 4, kind: input, shape index: {}]   ;;  %s1765_s5 = inlined_call_operand.hbm [shape: bf16[128,128], index: 5, kind: input, shape index: {}]   ;;  %s1766_s6 = inlined_call_operand.vmem [shape: f32[1,128], index: 6, kind: input, shape index: {}]   ;;  %s1767_s7 = inlined_call_operand.hbm [shape: bf16[128,256], index: 7, kind: input, shape index: {}]   ;;  %s1768_s8 = inlined_call_operand.vmem [shape: f32[1,256], index: 8, kind: input, shape index: {}]   ;;  %s1769_s9 = inlined_call_operand.hbm [shape: bf16[128,128], index: 9, kind: input, shape index: {}]   ;;  %s1770_s10 = inlined_call_operand.hbm [shape: bf16[128,128], index: 10, kind: input, shape index: {}]   ;;  %s1771_s11 = inlined_call_operand.vmem [shape: f32[1,128], index: 11, kind: input, shape index: {}]   ;;  %s1772_s12 = inlined_call_operand.hbm [shape: bf16[128,256], index: 12, kind: input, shape index: {}]   ;;  %s1773_s13 = inlined_call_operand.vmem [shape: f32[1,256], index: 13, kind: input, shape index: {}]   ;;  %s1774_s14 = inlined_call_operand.hbm [shape: f32[8,128], index: 14, kind: output, shape index: {}]  }
   0x1   :  { %20 = vsyncpa [#allocation6], 0 }
   0x2   :  { %21 = vsyncpa [#allocation9], 0 }
   0x3   :  { %22 = vsyncpa [#allocation12], 0 }
   0x4   :  { %23 = vsyncpa [#allocation15], 0 }
   0x5   :  { %24 = vsyncpa [#allocation4], 0  ;;  %s1551_s29 = smov [#allocation5]   ;;  %s1552_s15 = smov [#allocation8]  }
   0x6   :  { %s44_s30 = sshll.u32 %s1551_s29, 4  ;;  %s66_s16 = sshll.u32 %s1552_s15, 4  ;;  %s45_s30 = int_to_ptr.vmem [resolvable:$true] %s44_s30  ;;  %s67_s16 = int_to_ptr.vmem [resolvable:$true] %s66_s16 }
   0x7   :  { %s1347_s17 = scalar_lea.vmem %s45_s30, 128  ;;  %p1352_p1 = scmp.lt.s32.totalorder %s45_s30, %s45_s30 }
   0x8   :  { %p1348_p0 = scmp.ne.s32.totalorder %s45_s30, %s1347_s17  ;;  %p1353_p2 = scmp.lt.s32.totalorder %s1347_s17, %s1347_s17 }
   0xa   :  { %p1354_p3 = por %p1353_p2, %p1352_p1 }
   0xc   :  { %p1355_p4 = pnand %p1354_p3, %p1348_p0 }
   0xe   :  { %1358 = shalt.err (!%p1355_p4)
}
   0xf   :  { %47 = dma.hbm_to_vmem [thread:$0]  %s1761_s1, 128, %s45_s30, [#allocation6]  }
  0x10   :  { %s1367_s20 = scalar_lea.vmem %s67_s16, 2048  ;;  %p1372_p6 = scmp.lt.s32.totalorder %s67_s16, %s67_s16 }
  0x11   :  { %p1368_p5 = scmp.ne.s32.totalorder %s67_s16, %s1367_s20  ;;  %p1373_p7 = scmp.lt.s32.totalorder %s1367_s20, %s1367_s20 }
  0x13   :  { %p1374_p8 = por %p1373_p7, %p1372_p6 }
  0x15   :  { %p1375_p9 = pnand %p1374_p8, %p1368_p5 }
  0x17   :  { %1378 = shalt.err (!%p1375_p9)
}
  0x18   :  { %s1553_s21 = smov 128   ;;  %s1554_s22 = smov 8  }
  0x19   :  { %72 = dma.hbm_to_vmem [thread:$0]  %s1763_s3, 2048, %s67_s16, [#allocation9], %s1553_s21, %s1553_s21, %s1554_s22  }
  0x1a   :  { %s1555_s25 = smov [#allocation11]  }
  0x1b   :  { %s94_s26 = sshll.u32 %s1555_s25, 4  ;;  %s95_s26 = int_to_ptr.vmem [resolvable:$true] %s94_s26 }
  0x1c   :  { %s1387_s1 = scalar_lea.vmem %s95_s26, 2048  ;;  %p1392_p11 = scmp.lt.s32.totalorder %s95_s26, %s95_s26 }
  0x1d   :  { %p1388_p10 = scmp.ne.s32.totalorder %s95_s26, %s1387_s1  ;;  %p1393_p12 = scmp.lt.s32.totalorder %s1387_s1, %s1387_s1 }
  0x1f   :  { %p1394_p13 = por %p1393_p12, %p1392_p11 }
  0x21   :  { %p1395_p0 = pnand %p1394_p13, %p1388_p10 }
  0x23   :  { %1398 = shalt.err (!%p1395_p0)
}
  0x24   :  { %100 = dma.hbm_to_vmem [thread:$0]  %s1767_s7, 2048, %s95_s26, [#allocation12], %s1553_s21, %s1553_s21, %s1554_s22  }
  0x25   :  { %s1556_s29 = smov [#allocation14]   ;;  %s1557_s3 = smov [#allocation2]  }
  0x26   :  { %s120_s30 = sshll.u32 %s1556_s29, 4  ;;  %s31_s15 = sshll.u32 %s1557_s3, 4  ;;  %s121_s30 = int_to_ptr.vmem [resolvable:$true] %s120_s30  ;;  %s32_s15 = int_to_ptr.vmem [resolvable:$true] %s31_s15 }
  0x27   :  { %s1407_s16 = scalar_lea.vmem %s121_s30, 1024  ;;  %p1412_p2 = scmp.lt.s32.totalorder %s121_s30, %s121_s30 }
  0x28   :  { %p1408_p1 = scmp.ne.s32.totalorder %s121_s30, %s1407_s16  ;;  %p1413_p3 = scmp.lt.s32.totalorder %s1407_s16, %s1407_s16 }
  0x2a   :  { %p1414_p4 = por %p1413_p3, %p1412_p2 }
  0x2c   :  { %p1415_p5 = pnand %p1414_p4, %p1408_p1 }
  0x2e   :  { %1418 = shalt.err (!%p1415_p5)
}
  0x2f   :  { %s1558_s17 = smov 64   ;;  %s1559_s18 = smov 4  }
  0x30   :  { %126 = dma.hbm_to_vmem [thread:$0]  %s1770_s10, 1024, %s121_s30, [#allocation15], %s1558_s17, %s1558_s17, %s1559_s18  }
  0x31   :  { %s1427_s7 = scalar_lea.vmem %s32_s15, 64  ;;  %p1432_p7 = scmp.lt.s32.totalorder %s32_s15, %s32_s15 }
  0x32   :  { %p1428_p6 = scmp.ne.s32.totalorder %s32_s15, %s1427_s7  ;;  %p1433_p8 = scmp.lt.s32.totalorder %s1427_s7, %s1427_s7 }
  0x34   :  { %p1434_p9 = por %p1433_p8, %p1432_p7 }
  0x36   :  { %p1435_p10 = pnand %p1434_p9, %p1428_p6 }
  0x38   :  { %1438 = shalt.err (!%p1435_p10)
}
  0x39   :  { %34 = dma.hbm_to_vmem [thread:$0]  %s1760_s0, 64, %s32_s15, [#allocation3]  }
  0x3a   :  { %s1560_s25 = smov [#allocation7]   ;;  %s1561_s1 = smov [#allocation10]  }
  0x3b   :  { %s57_s26 = sshll.u32 %s1560_s25, 4  ;;  %s80_s27 = sshll.u32 %s1561_s1, 4  ;;  %s58_s26 = int_to_ptr.vmem [resolvable:$true] %s57_s26  ;;  %s81_s27 = int_to_ptr.vmem [resolvable:$true] %s80_s27 }
  0x3c   :  { %s1447_s28 = scalar_lea.vmem %s58_s26, 128  ;;  %p1452_p12 = scmp.lt.s32.totalorder %s58_s26, %s58_s26 }
  0x3d   :  { %p1448_p11 = scmp.ne.s32.totalorder %s58_s26, %s1447_s28  ;;  %p1453_p13 = scmp.lt.s32.totalorder %s1447_s28, %s1447_s28 }
  0x3f   :  { %p1454_p0 = por %p1453_p13, %p1452_p12 }
  0x41   :  { %p1455_p1 = pnand %p1454_p0, %p1448_p11 }
  0x43   :  { %1458 = shalt.err (!%p1455_p1)
}
  0x44   :  { %60 = dma.hbm_to_vmem [thread:$0]  %s1762_s2, 128, %s58_s26, [#allocation6]  }
  0x45   :  { %s1467_s30 = scalar_lea.vmem %s81_s27, 1024  ;;  %p1472_p3 = scmp.lt.s32.totalorder %s81_s27, %s81_s27 }
  0x46   :  { %p1468_p2 = scmp.ne.s32.totalorder %s81_s27, %s1467_s30  ;;  %p1473_p4 = scmp.lt.s32.totalorder %s1467_s30, %s1467_s30 }
  0x48   :  { %p1474_p5 = por %p1473_p4, %p1472_p3 }
  0x4a   :  { %p1475_p6 = pnand %p1474_p5, %p1468_p2 }
  0x4c   :  { %1478 = shalt.err (!%p1475_p6)
}
  0x4d   :  { %86 = dma.hbm_to_vmem [thread:$0]  %s1765_s5, 1024, %s81_s27, [#allocation9], %s1558_s17, %s1558_s17, %s1559_s18  }
  0x4e   :  { %s1562_s15 = smov [#allocation13]   ;;  %s1563_s19 = smov [#allocation16]  }
  0x4f   :  { %s108_s16 = sshll.u32 %s1562_s15, 4  ;;  %s134_s2 = sshll.u32 %s1563_s19, 4  ;;  %s109_s16 = int_to_ptr.vmem [resolvable:$true] %s108_s16  ;;  %s135_s2 = int_to_ptr.vmem [resolvable:$true] %s134_s2 }
  0x50   :  { %s1487_s20 = scalar_lea.vmem %s109_s16, 1024  ;;  %p1492_p8 = scmp.lt.s32.totalorder %s109_s16, %s109_s16 }
  0x51   :  { %p1488_p7 = scmp.ne.s32.totalorder %s109_s16, %s1487_s20  ;;  %p1493_p9 = scmp.lt.s32.totalorder %s1487_s20, %s1487_s20 }
  0x53   :  { %p1494_p10 = por %p1493_p9, %p1492_p8 }
  0x55   :  { %p1495_p11 = pnand %p1494_p10, %p1488_p7 }
  0x57   :  { %1498 = shalt.err (!%p1495_p11)
}
  0x58   :  { %114 = dma.hbm_to_vmem [thread:$0]  %s1769_s9, 1024, %s109_s16, [#allocation12], %s1558_s17, %s1558_s17, %s1559_s18  }
  0x59   :  { %s1507_s5 = scalar_lea.vmem %s135_s2, 2048  ;;  %p1512_p13 = scmp.lt.s32.totalorder %s135_s2, %s135_s2 }
  0x5a   :  { %p1508_p12 = scmp.ne.s32.totalorder %s135_s2, %s1507_s5  ;;  %p1513_p0 = scmp.lt.s32.totalorder %s1507_s5, %s1507_s5 }
  0x5c   :  { %p1514_p1 = por %p1513_p0, %p1512_p13 }
  0x5e   :  { %p1515_p2 = pnand %p1514_p1, %p1508_p12 }
  0x60   :  { %1518 = shalt.err (!%p1515_p2)
}
  0x61   :  { %140 = dma.hbm_to_vmem [thread:$0]  %s1772_s12, 2048, %s135_s2, [#allocation15], %s1553_s21, %s1553_s21, %s1554_s22  }
  0x62   :  { %1539 = dma.done.wait [#allocation3], 64  }
  0x63   :  { %1540 = vsyncadd [#allocation3], 4294967232 }
  0x64   :  { %1541 = dma.done.wait [#allocation6], 256  }
  0x65   :  { %1542 = vsyncadd [#allocation6], 4294967040 }
  0x66   :  { %1543 = dma.done.wait [#allocation9], 3072  }
  0x67   :  { %1544 = vsyncadd [#allocation9], 4294964224 }
  0x68   :  { %1545 = dma.done.wait [#allocation12], 3072  }
  0x69   :  { %1546 = vsyncadd [#allocation12], 4294964224 }
  0x6a   :  { %1547 = dma.done.wait [#allocation15], 3072  }
  0x6b   :  { %1548 = vsyncadd [#allocation15], 4294964224  ;;  %v1564_v0 = vmov 0   ;;  %v1223_v1 = vld [vmem:[#allocation8 + $0x74] ss:$8 sps:$4 sm:$0xff]   ;;  %v1565_v19 = vmov 0.0   ;;  %v193_v27 = vlaneseq }
  0x6c   :  { %315 = vmatprep.mubr.bf16.mxu0 %v1564_v0  ;;  %v1225_v2 = vld [vmem:[#allocation8 + $0x70] ss:$8 sps:$4 sm:$0xff]   ;;  %283 = vmatprep.subr.bf16.mxu0 %v1223_v1  ;;  %v1226_v3 = vld [vmem:[#allocation8 + $0x64] ss:$8 sps:$4 sm:$0xff]   ;;  %v1228_v4 = vld [vmem:[#allocation8 + $0x60] ss:$8 sps:$4 sm:$0xff]  }
  0x6d   :  { %284 = vmatpush1.bf16.msra.mxu0 %v1225_v2  ;;  %v1229_v5 = vld [vmem:[#allocation8 + $0x54] ss:$8 sps:$4 sm:$0xff]   ;;  %v1231_v6 = vld [vmem:[#allocation8 + $0x50] ss:$8 sps:$4 sm:$0xff]   ;;  %v1232_v7 = vld [vmem:[#allocation8 + $0x44] ss:$8 sps:$4 sm:$0xff]   ;;  %1146 = vmatprep.subr.bf16.mxu1 %v1565_v19 }
  0x6e   :  { %285 = vmatprep.subr.bf16.mxu0 %v1226_v3  ;;  %v1234_v8 = vld [vmem:[#allocation8 + $0x40] ss:$8 sps:$4 sm:$0xff]   ;;  %v1235_v9 = vld [vmem:[#allocation8 + $0x34] ss:$8 sps:$4 sm:$0xff]   ;;  %v1237_v10 = vld [vmem:[#allocation8 + $0x30] ss:$8 sps:$4 sm:$0xff]  }
  0x6f   :  { %v1238_v11 = vld [vmem:[#allocation8 + $0x24] ss:$8 sps:$4 sm:$0xff]   ;;  %v1240_v12 = vld [vmem:[#allocation8 + $0x20] ss:$8 sps:$4 sm:$0xff]   ;;  %v1241_v13 = vld [vmem:[#allocation8 + $0x14] ss:$8 sps:$4 sm:$0xff]  }
  0x70   :  { %v1243_v14 = vld [vmem:[#allocation8 + $0x10] ss:$8 sps:$4 sm:$0xff]   ;;  %v1244_v15 = vld [vmem:[#allocation8 + $0x4] ss:$8 sps:$4 sm:$0xff]   ;;  %v1246_v16 = vld [vmem:[#allocation8] ss:$8 sps:$4 sm:$0xff]  }
  0x71   :  { %286 = vmatpush1.bf16.msra.mxu0 %v1228_v4  ;;  %v174_v17 = vld [vmem:[#allocation2] sm:$0xf]  ;;  %v1247_v18 = vld [vmem:[#allocation10 + $0x38] sm:$0xff]   ;;  %vm1566_vm0 = vmmov 0   ;;  %v1248_v20 = vld [vmem:[#allocation10 + $0x30] sm:$0xff]   ;;  %v1701_v28 = vshrl.u32 %v193_v27, 7 }
  0x72   :  { %287 = vmatprep.subr.bf16.mxu0 %v1229_v5  ;;  %1162 = vmatprep.mubr.msk.bf16.mxu1 %vm1566_vm0, %v1565_v19  ;;  %v1249_v21 = vld [vmem:[#allocation10 + $0x28] sm:$0xff]   ;;  %v1250_v22 = vld [vmem:[#allocation10 + $0x20] sm:$0xff]   ;;  %v1251_v23 = vld [vmem:[#allocation10 + $0x18] sm:$0xff]   ;;  %s1567_s26 = smov [#allocation17]  }
  0x73   :  { %1147 = vmatpush3.bf16.msra.mxu1 %v1247_v18  ;;  %v1252_v24 = vld [vmem:[#allocation10 + $0x10] sm:$0xff]   ;;  %v1253_v25 = vld [vmem:[#allocation10 + $0x8] sm:$0xff]   ;;  %v1254_v26 = vld [vmem:[#allocation10] sm:$0xff]   ;;  %v1704_v29 = vsub.s32 0, %v1701_v28  ;;  %s1032_s1 = sshll.u32 %s1567_s26, 4  ;;  %s1033_s1 = int_to_ptr.vmem [resolvable:$true] %s1032_s1 }
  0x74   :  { %1148 = vmatprep.subr.bf16.mxu1 %v1565_v19  ;;  %v1709_v30 = vld [vmem:[%s1764_s4] sm:$0x3]  ;;  %v1257_v50 = vld [vmem:[#allocation11 + $0x74] ss:$8 sps:$4 sm:$0xff]   ;;  %v1255_v51 = vld [vmem:[#allocation11 + $0x70] ss:$8 sps:$4 sm:$0xff]   ;;  %p1524_p4 = scmp.lt.s32.totalorder %s1033_s1, %s1033_s1 }
  0x75   :  { %288 = vmatpush1.bf16.msra.mxu0 %v1231_v6  ;;  %v196_v31 = vrot.slane %v1709_v30, %v1704_v29  ;;  %v1260_v52 = vld [vmem:[#allocation11 + $0x64] ss:$8 sps:$4 sm:$0xff]   ;;  %v1258_v53 = vld [vmem:[#allocation11 + $0x60] ss:$8 sps:$4 sm:$0xff]   ;;  %v1263_v54 = vld [vmem:[#allocation11 + $0x54] ss:$8 sps:$4 sm:$0xff]  }
  0x76   :  { %289 = vmatprep.subr.bf16.mxu0 %v1232_v7  ;;  %v1261_v55 = vld [vmem:[#allocation11 + $0x50] ss:$8 sps:$4 sm:$0xff]   ;;  %v1266_v56 = vld [vmem:[#allocation11 + $0x44] ss:$8 sps:$4 sm:$0xff]   ;;  %v1264_v57 = vld [vmem:[#allocation11 + $0x40] ss:$8 sps:$4 sm:$0xff]  }
  0x77   :  { %1149 = vmatpush3.bf16.msra.mxu1 %v1248_v20  ;;  %v1269_v58 = vld [vmem:[#allocation11 + $0x34] ss:$8 sps:$4 sm:$0xff]   ;;  %v1267_v59 = vld [vmem:[#allocation11 + $0x30] ss:$8 sps:$4 sm:$0xff]   ;;  %v1272_v60 = vld [vmem:[#allocation11 + $0x24] ss:$8 sps:$4 sm:$0xff]  }
  0x78   :  { %1150 = vmatprep.subr.bf16.mxu1 %v1565_v19  ;;  %v1270_v61 = vld [vmem:[#allocation11 + $0x20] ss:$8 sps:$4 sm:$0xff]   ;;  %v1275_v62 = vld [vmem:[#allocation11 + $0x14] ss:$8 sps:$4 sm:$0xff]   ;;  %v1273_v63 = vld [vmem:[#allocation11 + $0x10] ss:$8 sps:$4 sm:$0xff]  }
  0x79   :  { %290 = vmatpush1.bf16.msra.mxu0 %v1234_v8  ;;  %v1278_v1 = vld [vmem:[#allocation11 + $0x4] ss:$8 sps:$4 sm:$0xff]   ;;  %v1276_v2 = vld [vmem:[#allocation11] ss:$8 sps:$4 sm:$0xff]   ;;  %v1279_v3 = vld [vmem:[#allocation13 + $0x38] sm:$0xff]  }
  0x7a   :  { %291 = vmatprep.subr.bf16.mxu0 %v1235_v9  ;;  %v1061_v4 = vld [vmem:[%s1766_s6] ss:$0 sm:$0xff]  ;;  %v1283_v27 = vld [vmem:[#allocation13 + $0x18] sm:$0xff]  }
  0x7b   :  { %1151 = vmatpush3.bf16.msra.mxu1 %v1249_v21 }
  0x7c   :  { %1152 = vmatprep.subr.bf16.mxu1 %v1565_v19 }
  0x7d   :  { %292 = vmatpush1.bf16.msra.mxu0 %v1237_v10 }
  0x7e   :  { %293 = vmatprep.subr.bf16.mxu0 %v1238_v11 }
  0x7f   :  { %1153 = vmatpush3.bf16.msra.mxu1 %v1250_v22 }
  0x80   :  { %1154 = vmatprep.subr.bf16.mxu1 %v1565_v19 }
  0x81   :  { %294 = vmatpush1.bf16.msra.mxu0 %v1240_v12 }
  0x82   :  { %295 = vmatprep.subr.bf16.mxu0 %v1241_v13 }
  0x83   :  { %1155 = vmatpush3.bf16.msra.mxu1 %v1251_v23 }
  0x84   :  { %1156 = vmatprep.subr.bf16.mxu1 %v1565_v19 }
  0x85   :  { %296 = vmatpush1.bf16.msra.mxu0 %v1243_v14 }
  0x86   :  { %297 = vmatprep.subr.bf16.mxu0 %v1244_v15 }
  0x87   :  { %1157 = vmatpush3.bf16.msra.mxu1 %v1252_v24  ;;  %v1280_v24 = vld [vmem:[#allocation13 + $0x30] sm:$0xff]  }
  0x88   :  { %1158 = vmatprep.subr.bf16.mxu1 %v1565_v19 }
  0x89   :  { %298 = vmatpush1.bf16.msra.mxu0 %v1246_v16 }
  0x8a   :  { %573 = vmatprep.subr.bf16.mxu0 %v1257_v50 }
  0x8b   :  { %1159 = vmatpush3.bf16.msra.mxu1 %v1253_v25  ;;  %v1281_v25 = vld [vmem:[#allocation13 + $0x28] sm:$0xff]  }
  0x8c   :  { %316 = vmatmul.mubr.bf16.vlgmr.msra.gmra.mxu0 %v174_v17  ;;  %1160 = vmatprep.subr.bf16.mxu1 %v1565_v19 }
  0x8d   :  { %605 = vmatprep.mubr.bf16.mxu0 %v1564_v0  ;;  %574 = vmatpush1.bf16.msra.mxu0 %v1255_v51  ;;  %v1287_v51 = vld [vmem:[#allocation14 + $0x38] sm:$0xff]  }
  0x8e   :  { %575 = vmatprep.subr.bf16.mxu0 %v1260_v52  ;;  %v1288_v52 = vld [vmem:[#allocation14 + $0x30] sm:$0xff]  }
  0x8f   :  { %1161 = vmatpush3.bf16.msra.mxu1 %v1254_v26  ;;  %v1282_v26 = vld [vmem:[#allocation13 + $0x20] sm:$0xff]  }
  0x90   :  { %1166 = vmatprep.subr.bf16.mxu1 %v1565_v19 }
  0x91   :  { %576 = vmatpush1.bf16.msra.mxu0 %v1258_v53  ;;  %v1289_v53 = vld [vmem:[#allocation14 + $0x28] sm:$0xff]  }
  0x92   :  { %577 = vmatprep.subr.bf16.mxu0 %v1263_v54  ;;  %v1290_v54 = vld [vmem:[#allocation14 + $0x20] sm:$0xff]  }
  0x95   :  { %578 = vmatpush1.bf16.msra.mxu0 %v1261_v55  ;;  %v1291_v55 = vld [vmem:[#allocation14 + $0x18] sm:$0xff]  }
  0x96   :  { %579 = vmatprep.subr.bf16.mxu0 %v1266_v56  ;;  %v1293_v56 = vld [vmem:[#allocation14 + $0x8] sm:$0xff]  }
  0x99   :  { %580 = vmatpush1.bf16.msra.mxu0 %v1264_v57  ;;  %v1294_v57 = vld [vmem:[#allocation14] sm:$0xff]  }
  0x9a   :  { %581 = vmatprep.subr.bf16.mxu0 %v1269_v58 }
  0x9d   :  { %582 = vmatpush1.bf16.msra.mxu0 %v1267_v59 }
  0x9e   :  { %583 = vmatprep.subr.bf16.mxu0 %v1272_v60 }
  0xa1   :  { %584 = vmatpush1.bf16.msra.mxu0 %v1270_v61 }
  0xa2   :  { %585 = vmatprep.subr.bf16.mxu0 %v1275_v62 }
  0xa5   :  { %586 = vmatpush1.bf16.msra.mxu0 %v1273_v63 }
  0xa6   :  { %587 = vmatprep.subr.bf16.mxu0 %v1278_v1 }
  0xa9   :  { %588 = vmatpush1.bf16.msra.mxu0 %v1276_v2 }
  0xaa   :  { %1186 = vmatprep.subr.bf16.mxu0 %v1565_v19 }
 0x14c   :  { %v317_v32 = vpop.f32.mrf.mxu0 }
 0x14d   :  { %v318_v33 = vadd.f32 %v317_v32, %v196_v31  ;;  %v1284_v31 = vld [vmem:[#allocation13 + $0x10] sm:$0xff]   ;;  %v1285_v32 = vld [vmem:[#allocation13 + $0x8] sm:$0xff]  }
 0x14e   :  { %v1713_v34 = vpop.f32.mrf.mxu0 }
 0x14f   :  { %v325_v35 = vmin.f32 %v318_v33, 20.0  ;;  %vm324_vm2 = vcmp.gt.f32.partialorder %v318_v33, 20.0 }
 0x150   :  { %v321_v36 = vpop.f32.mrf.mxu0 }
 0x151   :  { %v326_v37 = vmul.f32 1.442695, %v325_v35  ;;  %v1731_v35 = vsub.s32 1, %v1701_v28  ;;  %v481_v36 = vld [vmem:[%s1768_s8] sm:$0x3] }
 0x152   :  { %v322_v38 = vpop.f32.mrf.mxu0 }
 0x153   :  { %1319 = vpow2.f32 %v326_v37  ;;  %v490_v37 = vrot.slane %v481_v36, %v1731_v35  ;;  %v200_v58 = vrot.slane %v1709_v30, %v1731_v35 }
 0x155   :  { %v320_v59 = vadd.f32 %v1713_v34, %v200_v58 }
 0x160   :  { %v1320_v39 = vpop.eup %1319 }
 0x161   :  { %v328_v40 = vadd.f32 1.0, %v1320_v39  ;;  %v331_v41 = vmul.f32 -0.5, %v1320_v39  ;;  %v334_v43 = vand.u32 2147483647, %v1320_v39 }
 0x163   :  { %1321 = vlog2.f32 %v328_v40  ;;  %v332_v42 = vadd.f32 1.0, %v331_v41  ;;  %vm335_vm1 = vcmp.lt.f32.partialorder %v334_v43, 0.0004427343 }
 0x165   :  { %v333_v46 = vmul.f32 %v1320_v39, %v332_v42 }
 0x170   :  { %v1322_v44 = vpop.eup %1321 }
 0x171   :  { %v330_v45 = vmul.f32 0.6931472, %v1322_v44 }
 0x173   :  { %v336_v47 = vsel %vm335_vm1, %v333_v46, %v330_v45  ;;  %v486_v45 = vrot.slane %v481_v36, %v1704_v29  ;;  %v617_v46 = vld [vmem:[#allocation5] sm:$0xff] }
 0x174   :  { %v337_v48 = vsel %vm324_vm2, %v318_v33, %v336_v47  ;;  %v1286_v33 = vld [vmem:[#allocation13] sm:$0xff]  }
 0x175   :  { %v338_v49 = vpack.c.bf16 %v337_v48, %v337_v48 }
 0x177   :  { %1163 = vmatmul.mubr.bf16.vlgmr.msra.gmra.mxu1 %v338_v49 }
 0x178   :  { %1182 = vmatprep.mubr.msk.bf16.mxu1 %vm1566_vm0, %v1565_v19  ;;  %1167 = vmatpush3.bf16.msra.mxu1 %v1279_v3 }
 0x179   :  { %1168 = vmatprep.subr.bf16.mxu1 %v1565_v19 }
 0x17c   :  { %1169 = vmatpush3.bf16.msra.mxu1 %v1280_v24  ;;  %v1310_v24 = vld [vmem:[#allocation16 + $0x20] ss:$8 sps:$4 sm:$0xff]  }
 0x17d   :  { %1170 = vmatprep.subr.bf16.mxu1 %v1565_v19 }
 0x180   :  { %1171 = vmatpush3.bf16.msra.mxu1 %v1281_v25  ;;  %v1315_v25 = vld [vmem:[#allocation16 + $0x14] ss:$8 sps:$4 sm:$0xff]  }
 0x181   :  { %1172 = vmatprep.subr.bf16.mxu1 %v1565_v19 }
 0x184   :  { %1173 = vmatpush3.bf16.msra.mxu1 %v1282_v26  ;;  %v1313_v26 = vld [vmem:[#allocation16 + $0x10] ss:$8 sps:$4 sm:$0xff]  }
 0x185   :  { %1174 = vmatprep.subr.bf16.mxu1 %v1565_v19 }
 0x188   :  { %1175 = vmatpush3.bf16.msra.mxu1 %v1283_v27  ;;  %v1318_v27 = vld [vmem:[#allocation16 + $0x4] ss:$8 sps:$4 sm:$0xff]  }
 0x189   :  { %1176 = vmatprep.subr.bf16.mxu1 %v1565_v19 }
 0x18c   :  { %1177 = vmatpush3.bf16.msra.mxu1 %v1284_v31  ;;  %v1316_v31 = vld [vmem:[#allocation16] ss:$8 sps:$4 sm:$0xff]  }
 0x18d   :  { %1178 = vmatprep.subr.bf16.mxu1 %v1565_v19 }
 0x190   :  { %1179 = vmatpush3.bf16.msra.mxu1 %v1285_v32  ;;  %v1094_v32 = vld [vmem:[%s1771_s11] ss:$0 sm:$0xff] }
 0x191   :  { %1180 = vmatprep.subr.bf16.mxu1 %v1565_v19 }
 0x194   :  { %1181 = vmatpush3.bf16.msra.mxu1 %v1286_v33 }
 0x237   :  { %v444_v5 = vpop.f32.mrf.mxu1 }
 0x238   :  { %v445_v6 = vadd.f32 %v1061_v4, %v444_v5 }
 0x239   :  { %v1164_v7 = vpop.f32.mrf.mxu1 }
 0x23a   :  { %v451_v8 = vmin.f32 %v445_v6, 20.0  ;;  %vm450_vm4 = vcmp.gt.f32.partialorder %v445_v6, 20.0 }
 0x23b   :  { %v447_v9 = vpop.f32.mrf.mxu1 }
 0x23c   :  { %v452_v10 = vmul.f32 1.442695, %v451_v8 }
 0x23d   :  { %v1165_v11 = vpop.f32.mrf.mxu1 }
 0x23e   :  { %1323 = vpow2.f32 %v452_v10 }
 0x24b   :  { %v1324_v12 = vpop.eup %1323 }
 0x24c   :  { %v454_v13 = vadd.f32 1.0, %v1324_v12  ;;  %v457_v14 = vmul.f32 -0.5, %v1324_v12  ;;  %v460_v16 = vand.u32 2147483647, %v1324_v12 }
 0x24e   :  { %1325 = vlog2.f32 %v454_v13  ;;  %v458_v15 = vadd.f32 1.0, %v457_v14  ;;  %vm461_vm3 = vcmp.lt.f32.partialorder %v460_v16, 0.0004427343  ;;  %v1295_v13 = vld [vmem:[#allocation16 + $0x70] ss:$8 sps:$4 sm:$0xff]  }
 0x24f   :  { %v1300_v14 = vld [vmem:[#allocation16 + $0x64] ss:$8 sps:$4 sm:$0xff]   ;;  %v1303_v16 = vld [vmem:[#allocation16 + $0x54] ss:$8 sps:$4 sm:$0xff]  }
 0x250   :  { %v459_v20 = vmul.f32 %v1324_v12, %v458_v15  ;;  %v1297_v12 = vld [vmem:[#allocation16 + $0x74] ss:$8 sps:$4 sm:$0xff]   ;;  %v1298_v15 = vld [vmem:[#allocation16 + $0x60] ss:$8 sps:$4 sm:$0xff]  }
 0x251   :  { %975 = vmatprep.subr.bf16.mxu1 %v1297_v12 }
 0x25b   :  { %v1326_v17 = vpop.eup %1325 }
 0x25c   :  { %v456_v18 = vmul.f32 0.6931472, %v1326_v17  ;;  %v1301_v17 = vld [vmem:[#allocation16 + $0x50] ss:$8 sps:$4 sm:$0xff]  }
 0x25e   :  { %v462_v21 = vsel %vm461_vm3, %v459_v20, %v456_v18  ;;  %v1306_v18 = vld [vmem:[#allocation16 + $0x44] ss:$8 sps:$4 sm:$0xff]   ;;  %v1304_v20 = vld [vmem:[#allocation16 + $0x40] ss:$8 sps:$4 sm:$0xff]  }
 0x25f   :  { %v463_v22 = vsel %vm450_vm4, %v445_v6, %v462_v21  ;;  %v1309_v21 = vld [vmem:[#allocation16 + $0x34] ss:$8 sps:$4 sm:$0xff]  }
 0x260   :  { %v464_v23 = vpack.c.bf16 %v463_v22, %v463_v22  ;;  %v1307_v22 = vld [vmem:[#allocation16 + $0x30] ss:$8 sps:$4 sm:$0xff]  }
 0x262   :  { %606 = vmatmul.mubr.bf16.vlgmr.msra.gmra.mxu0 %v464_v23  ;;  %v1312_v23 = vld [vmem:[#allocation16 + $0x24] ss:$8 sps:$4 sm:$0xff]  }
 0x263   :  { %1202 = vmatprep.mubr.msk.bf16.mxu0 %vm1566_vm0, %v1565_v19  ;;  %1187 = vmatpush3.bf16.msra.mxu0 %v1287_v51 }
 0x264   :  { %1188 = vmatprep.subr.bf16.mxu0 %v1565_v19 }
 0x267   :  { %1189 = vmatpush3.bf16.msra.mxu0 %v1288_v52  ;;  %v883_v52 = vld [vmem:[%s1773_s13] sm:$0x3]  ;;  %s1519_s13 = scalar_lea.vmem %s1033_s1, 128 }
 0x268   :  { %1190 = vmatprep.subr.bf16.mxu0 %v1565_v19  ;;  %p1520_p3 = scmp.ne.s32.totalorder %s1033_s1, %s1519_s13  ;;  %p1525_p5 = scmp.lt.s32.totalorder %s1519_s13, %s1519_s13 }
 0x26a   :  { %p1526_p6 = por %p1525_p5, %p1524_p4 }
 0x26b   :  { %1191 = vmatpush3.bf16.msra.mxu0 %v1289_v53  ;;  %v892_v53 = vrot.slane %v883_v52, %v1731_v35 }
 0x26c   :  { %1192 = vmatprep.subr.bf16.mxu0 %v1565_v19  ;;  %p1527_p7 = pnand %p1526_p6, %p1520_p3 }
 0x26f   :  { %1193 = vmatpush3.bf16.msra.mxu0 %v1290_v54 }
 0x270   :  { %1194 = vmatprep.subr.bf16.mxu0 %v1565_v19 }
 0x273   :  { %1195 = vmatpush3.bf16.msra.mxu0 %v1291_v55 }
 0x274   :  { %1196 = vmatprep.subr.bf16.mxu0 %v1565_v19 }
 0x322   :  { %v607_v38 = vpop.f32.mrf.mxu0 }
 0x323   :  { %v608_v28 = vadd.f32 %v607_v38, %v486_v45 }
 0x324   :  { %v609_v39 = vpop.f32.mrf.mxu0 }
 0x325   :  { %v610_v40 = vadd.f32 %v609_v39, %v490_v37 }
 0x326   :  { %v611_v41 = vpop.f32.mrf.mxu0 }
 0x327   :  { %v614_v42 = vmul.f32 0.5, %v610_v40 }
 0x328   :  { %v612_v43 = vpop.f32.mrf.mxu0 }
 0x329   :  { %v615_v44 = vmul.f32 1.442695, %v614_v42 }
 0x32b   :  { %1327 = vpow2.f32 %v615_v44 }
 0x338   :  { %v1328_v47 = vpop.eup %1327 }
 0x339   :  { %v618_v48 = vmul.f32 %v1328_v47, %v617_v46 }
 0x33b   :  { %v619_v49 = vadd.f32 %v618_v48, %v608_v28 }
 0x33d   :  { %v620_v50 = vpack.c.bf16 %v619_v49, %v619_v49 }
 0x33f   :  { %1183 = vmatmul.mubr.bf16.vlgmr.msra.gmra.mxu1 %v620_v50 }
 0x340   :  { %1007 = vmatprep.mubr.bf16.mxu1 %v1564_v0  ;;  %v1292_v0 = vld [vmem:[#allocation14 + $0x10] sm:$0xff]   ;;  %976 = vmatpush1.bf16.msra.mxu1 %v1295_v13 }
 0x341   :  { %1197 = vmatpush3.bf16.msra.mxu0 %v1292_v0  ;;  %977 = vmatprep.subr.bf16.mxu1 %v1300_v14 }
 0x342   :  { %1198 = vmatprep.subr.bf16.mxu0 %v1565_v19 }
 0x344   :  { %978 = vmatpush1.bf16.msra.mxu1 %v1298_v15 }
 0x345   :  { %1199 = vmatpush3.bf16.msra.mxu0 %v1293_v56  ;;  %979 = vmatprep.subr.bf16.mxu1 %v1303_v16 }
 0x346   :  { %1200 = vmatprep.subr.bf16.mxu0 %v1565_v19 }
 0x348   :  { %980 = vmatpush1.bf16.msra.mxu1 %v1301_v17 }
 0x349   :  { %1201 = vmatpush3.bf16.msra.mxu0 %v1294_v57  ;;  %981 = vmatprep.subr.bf16.mxu1 %v1306_v18 }
 0x34c   :  { %982 = vmatpush1.bf16.msra.mxu1 %v1304_v20 }
 0x34d   :  { %983 = vmatprep.subr.bf16.mxu1 %v1309_v21 }
 0x350   :  { %984 = vmatpush1.bf16.msra.mxu1 %v1307_v22 }
 0x351   :  { %985 = vmatprep.subr.bf16.mxu1 %v1312_v23 }
 0x354   :  { %986 = vmatpush1.bf16.msra.mxu1 %v1310_v24 }
 0x355   :  { %987 = vmatprep.subr.bf16.mxu1 %v1315_v25 }
 0x358   :  { %988 = vmatpush1.bf16.msra.mxu1 %v1313_v26 }
 0x359   :  { %989 = vmatprep.subr.bf16.mxu1 %v1318_v27 }
 0x35c   :  { %990 = vmatpush1.bf16.msra.mxu1 %v1316_v31 }
 0x3ff   :  { %v719_v60 = vpop.f32.mrf.mxu1 }
 0x400   :  { %v725_v61 = vadd.f32 %v719_v60, %v320_v59  ;;  %v888_v60 = vrot.slane %v883_v52, %v1704_v29 }
 0x401   :  { %v1184_v62 = vpop.f32.mrf.mxu1 }
 0x402   :  { %v727_v63 = vmin.f32 %v725_v61, 20.0  ;;  %vm726_vm6 = vcmp.gt.f32.partialorder %v725_v61, 20.0 }
 0x403   :  { %v722_v1 = vpop.f32.mrf.mxu1 }
 0x404   :  { %v728_v2 = vmul.f32 1.442695, %v727_v63 }
 0x405   :  { %v1185_v3 = vpop.f32.mrf.mxu1 }
 0x406   :  { %1329 = vpow2.f32 %v728_v2 }
 0x413   :  { %v1330_v4 = vpop.eup %1329 }
 0x414   :  { %v730_v5 = vadd.f32 1.0, %v1330_v4  ;;  %v733_v6 = vmul.f32 -0.5, %v1330_v4  ;;  %v736_v7 = vand.u32 2147483647, %v1330_v4 }
 0x416   :  { %1331 = vlog2.f32 %v730_v5  ;;  %v734_v19 = vadd.f32 1.0, %v733_v6  ;;  %vm737_vm5 = vcmp.lt.f32.partialorder %v736_v7, 0.0004427343 }
 0x418   :  { %v735_v10 = vmul.f32 %v1330_v4, %v734_v19 }
 0x423   :  { %v1332_v8 = vpop.eup %1331 }
 0x424   :  { %v732_v9 = vmul.f32 0.6931472, %v1332_v8 }
 0x426   :  { %v738_v30 = vsel %vm737_vm5, %v735_v10, %v732_v9 }
 0x427   :  { %v739_v34 = vsel %vm726_vm6, %v725_v61, %v738_v30  ;;  %v1019_v61 = vld [vmem:[#allocation7] sm:$0xff] }
 0x428   :  { %v740_v11 = vpack.c.bf16 %v739_v34, %v739_v34 }
 0x42a   :  { %1203 = vmatmul.mubr.bf16.vlgmr.msra.gmra.mxu0 %v740_v11 }
 0x4ea   :  { %v846_v33 = vpop.f32.mrf.mxu0 }
 0x4eb   :  { %v847_v36 = vadd.f32 %v1094_v32, %v846_v33 }
 0x4ec   :  { %v1204_v37 = vpop.f32.mrf.mxu0 }
 0x4ed   :  { %v853_v38 = vmin.f32 %v847_v36, 20.0  ;;  %vm852_vm8 = vcmp.gt.f32.partialorder %v847_v36, 20.0 }
 0x4ee   :  { %v849_v39 = vpop.f32.mrf.mxu0 }
 0x4ef   :  { %v854_v40 = vmul.f32 1.442695, %v853_v38 }
 0x4f0   :  { %v1205_v41 = vpop.f32.mrf.mxu0 }
 0x4f1   :  { %1333 = vpow2.f32 %v854_v40 }
 0x4fe   :  { %v1334_v42 = vpop.eup %1333 }
 0x4ff   :  { %v856_v43 = vadd.f32 1.0, %v1334_v42  ;;  %v859_v44 = vmul.f32 -0.5, %v1334_v42  ;;  %v862_v46 = vand.u32 2147483647, %v1334_v42 }
 0x501   :  { %1335 = vlog2.f32 %v856_v43  ;;  %v860_v45 = vadd.f32 1.0, %v859_v44  ;;  %vm863_vm7 = vcmp.lt.f32.partialorder %v862_v46, 0.0004427343 }
 0x503   :  { %v861_v48 = vmul.f32 %v1334_v42, %v860_v45 }
 0x50e   :  { %v1336_v47 = vpop.eup %1335 }
 0x50f   :  { %v858_v28 = vmul.f32 0.6931472, %v1336_v47 }
 0x511   :  { %v864_v49 = vsel %vm863_vm7, %v861_v48, %v858_v28 }
 0x512   :  { %v865_v50 = vsel %vm852_vm8, %v847_v36, %v864_v49 }
 0x513   :  { %v866_v51 = vpack.c.bf16 %v865_v50, %v865_v50 }
 0x515   :  { %1008 = vmatmul.mubr.bf16.vlgmr.msra.gmra.mxu1 %v866_v51 }
 0x5d5   :  { %v1009_v54 = vpop.f32.mrf.mxu1 }
 0x5d6   :  { %v1010_v63 = vadd.f32 %v1009_v54, %v888_v60 }
 0x5d7   :  { %v1011_v55 = vpop.f32.mrf.mxu1 }
 0x5d8   :  { %v1012_v0 = vadd.f32 %v1011_v55, %v892_v53 }
 0x5d9   :  { %v1013_v56 = vpop.f32.mrf.mxu1 }
 0x5da   :  { %v1016_v57 = vmul.f32 0.5, %v1012_v0 }
 0x5db   :  { %v1014_v58 = vpop.f32.mrf.mxu1 }
 0x5dc   :  { %v1017_v59 = vmul.f32 1.442695, %v1016_v57 }
 0x5de   :  { %1337 = vpow2.f32 %v1017_v59 }
 0x5eb   :  { %v1338_v62 = vpop.eup %1337 }
 0x5ec   :  { %v1020_v1 = vmul.f32 %v1338_v62, %v1019_v61 }
 0x5ee   :  { %v1021_v2 = vadd.f32 %v1020_v1, %v1010_v63 }
 0x5f0   :  { %1022 = vst [vmem:[#allocation17] sm:$0xff] %v1021_v2 }
 0x5f1   :  { %1530 = shalt.err (!%p1527_p7)
}
 0x5f2   :  { %1035 = dma.vmem_to_hbm [thread:$0]  %s1033_s1, 128, %s1774_s14, [#allocation4]  }
 0x5f3   :  { %1549 = dma.done.wait [#allocation4], 128  }
 0x5f4   :  { %1550 = vsyncadd [#allocation4], 4294967168 }
 0x5f5   :  { %1039 = vsyncpa [#allocation3], 1 }
 0x5f6   :  { %1040 = vsyncpa [#allocation6], 1 }
 0x5f7   :  { %1041 = vsyncpa [#allocation9], 1 }
 0x5f8   :  { %1042 = vsyncpa [#allocation12], 1 }
 0x5f9   :  { %1043 = vsyncpa [#allocation15], 1 }
 0x5fa   :  { %1044 = vsyncpa [#allocation4], 1 }

</bundles_post_ra>
